<compile_context>
chip_gen: v7x
topology: tpu7x:2x2x1
jax: 0.10.0
libtpu: 0.0.40
codegen_flags: <defaults>
</compile_context>

<pallas_src>
import functools

import jax
import jax.numpy as jnp
from jax.experimental import pallas as pl
from jax.experimental.pallas import tpu as pltpu


def _round_up(x, m):
    return ((x + m - 1) // m) * m


def _accuracy_kernel(pred_ref, tgt_ref, out_ref, *, total_rows):
    i = pl.program_id(0)

    # Output buffers are not zero-initialized: init the accumulator at step 0.
    @pl.when(i == 0)
    def _():
        out_ref[0, 0] = jnp.int32(0)

    pred = pred_ref[...]                                   # (TILE_N, C) native dtype
    tgt = tgt_ref[...]                                     # (TILE_N, 1) int32
    tile_n, num_classes = pred.shape

    # argmax over the last (class) axis, first-occurrence on ties
    # (matches torch.argmax / jnp.argmax tie-breaking).
    max_val = jnp.max(pred, axis=-1, keepdims=True)                      # (TILE_N, 1)
    col_ids = jax.lax.broadcasted_iota(jnp.int32, (tile_n, num_classes), 1)
    cand = jnp.where(pred == max_val, col_ids, num_classes)              # C == "not max"
    labels = jnp.min(cand, axis=-1, keepdims=True)                       # (TILE_N, 1) int32

    # Mask padded tail rows (last block may extend past the true batch size).
    row_ids = jax.lax.broadcasted_iota(jnp.int32, (tile_n, 1), 0) + i * tile_n
    valid = row_ids < total_rows

    hits = jnp.where(jnp.logical_and(labels == tgt, valid),
                     jnp.int32(1), jnp.int32(0))                         # (TILE_N, 1) int32

    # Exact integer accumulation across grid steps; cast to f32 once outside.
    out_ref[0, 0] = out_ref[0, 0] + jnp.sum(hits)


def _correct_count(pred, target):
    """Returns the number of correct predictions as a scalar float32."""
    n_rows, n_classes = pred.shape
    tgt = target.reshape(n_rows, 1).astype(jnp.int32)

    itemsize = jnp.dtype(pred.dtype).itemsize

    # Pick TILE_N: largest multiple of 8 such that the double-buffered pred
    # stream stays well under a conservative (v7x-safe) VMEM budget, capped at
    # 2048 rows; never larger than the (8-rounded) batch itself.
    pred_budget_bytes = 8 * 1024 * 1024                    # 2 buffers of pred tiles
    rows_by_budget = max(8, pred_budget_bytes // (2 * n_classes * itemsize))
    tile_n = min(2048, rows_by_budget, _round_up(n_rows, 8))
    tile_n = max(8, (tile_n // 8) * 8)

    grid = (pl.cdiv(n_rows, tile_n),)

    kernel = functools.partial(_accuracy_kernel, total_rows=n_rows)

    out = pl.pallas_call(
        kernel,
        out_shape=jax.ShapeDtypeStruct((1, 1), jnp.int32),
        grid=grid,
        in_specs=[
            pl.BlockSpec((tile_n, n_classes), lambda i: (i, 0)),
            pl.BlockSpec((tile_n, 1), lambda i: (i, 0)),
        ],
        # Untiled SMEM output: resident accumulator across the whole grid.
        out_specs=pl.BlockSpec(memory_space=pltpu.MemorySpace.SMEM),
        compiler_params=pltpu.CompilerParams(
            dimension_semantics=("arbitrary",),            # reduction axis
            vmem_limit_bytes=32 * 1024 * 1024,             # v7x-safe scoped budget
        ),
        cost_estimate=pl.CostEstimate(
            flops=2 * n_rows * n_classes,
            transcendentals=0,
            bytes_accessed=n_rows * n_classes * itemsize + n_rows * 4 + 4,
        ),
    )(pred, tgt)                                           # native dtype, no upcast
    return out[0, 0].astype(jnp.float32)


class CustomAccuracy:
    """JAX/Pallas port of the PyTorch CustomAccuracy module."""

    def __init__(self, num_classes, reduce_type="mean"):
        self.num_classes = num_classes
        self.reduce_type = reduce_type
        # register_buffer equivalents (kept on device; no host syncs).
        self.correct = jnp.array(0.0, dtype=jnp.float32)
        self.total = jnp.array(0.0, dtype=jnp.float32)

    def forward(self, pred, target):
        correct = _correct_count(pred, target)             # device scalar f32
        numel = jnp.float32(target.size)                   # static python int -> const
        self.correct = self.correct + correct
        self.total = self.total + numel
        return correct / numel

    __call__ = forward

    def compute(self):
        if self.reduce_type == "mean":
            val = self.correct / jnp.maximum(self.total, jnp.float32(1.0))
        elif self.reduce_type == "sum":
            val = self.correct
        else:
            return None
        # total == 0 -> 0.0, computed on-device (no host readback).
        return jnp.where(self.total == 0, jnp.float32(0.0), val)

    def reset(self):
        self.correct = jnp.array(0.0, dtype=jnp.float32)
        self.total = jnp.array(0.0, dtype=jnp.float32)


if __name__ == "__main__":
    key = jax.random.PRNGKey(0)
    k1, k2, k3, k4 = jax.random.split(key, 4)

    num_classes = 16
    metric = CustomAccuracy(num_classes=num_classes, reduce_type="mean")

    # Call 1: float32 logits, batch divisible by 8.
    pred1 = jax.random.normal(k1, (64, num_classes), dtype=jnp.float32)
    tgt1 = jax.random.randint(k2, (64,), 0, num_classes, dtype=jnp.int32)
    acc1 = jax.block_until_ready(metric(pred1, tgt1))

    # Call 2: bf16 logits (native-dtype DMA path) + ragged batch (tail masking).
    pred2 = jax.random.normal(k3, (50, num_classes), dtype=jnp.bfloat16)
    tgt2 = jax.random.randint(k4, (50,), 0, num_classes, dtype=jnp.int32)
    acc2 = jax.block_until_ready(metric(pred2, tgt2))

    # Plain-JAX references (same semantics as the torch forward).
    ref_c1 = jnp.sum((jnp.argmax(pred1, axis=-1).astype(jnp.int32) == tgt1)
                     .astype(jnp.float32))
    ref_c2 = jnp.sum((jnp.argmax(pred2, axis=-1).astype(jnp.int32) == tgt2)
                     .astype(jnp.float32))
    ref_acc1 = ref_c1 / 64.0
    ref_acc2 = ref_c2 / 50.0
    ref_mean = (ref_c1 + ref_c2) / (64.0 + 50.0)

    assert jnp.allclose(acc1, ref_acc1), (acc1, ref_acc1)
    assert jnp.allclose(acc2, ref_acc2), (acc2, ref_acc2)
    assert jnp.allclose(metric.compute(), ref_mean), (metric.compute(), ref_mean)

    metric.reset()
    assert jnp.allclose(metric.compute(), 0.0)

    print("KERNEL_OK")
</pallas_src>

<mosaic_0001>
module attributes {stable_mosaic.version = 11 : i64} {
  func.func @_accuracy_kernel(%arg0: i32, %arg1: memref<64x16xf32, #tpu.memory_space<vmem>>, %arg2: memref<64x1xi32, #tpu.memory_space<vmem>>, %arg3: memref<1x1xi32, #tpu.memory_space<smem>>) attributes {dimension_semantics = [#tpu.dimension_semantics<arbitrary>], iteration_bounds = array<i64: 1>, scalar_prefetch = 0 : i64, scratch_operands = 0 : i64, tpu.core_type = #tpu.core_type<tc>, window_params = [{transform_indices = @transform_0, window_bounds = array<i64: 64, 16>}, {transform_indices = @transform_1, window_bounds = array<i64: 64, 1>}, {transform_indices = @transform_2, window_bounds = array<i64: 1, 1>}]} {
    %c0_i32 = arith.constant 0 : i32
    %0 = arith.cmpi eq, %arg0, %c0_i32 : i32
    %1 = arith.extui %0 : i1 to i32
    %c0_i32_0 = arith.constant 0 : i32
    %2 = arith.cmpi ne, %1, %c0_i32_0 : i32
    scf.if %2 {
      %c0_i32_12 = arith.constant 0 : i32
      %c0_13 = arith.constant 0 : index
      %c0_14 = arith.constant 0 : index
      %32 = memref.load %arg3[%c0_13, %c0_14] : memref<1x1xi32, #tpu.memory_space<smem>>
      memref.store %c0_i32_12, %arg3[%c0_13, %c0_14] : memref<1x1xi32, #tpu.memory_space<smem>>
    } else {
    }
    %c0 = arith.constant 0 : index
    %c0_1 = arith.constant 0 : index
    %3 = vector.load %arg1[%c0, %c0_1] : memref<64x16xf32, #tpu.memory_space<vmem>>, vector<64x16xf32>
    %c0_2 = arith.constant 0 : index
    %c0_3 = arith.constant 0 : index
    %4 = vector.load %arg2[%c0_2, %c0_3] : memref<64x1xi32, #tpu.memory_space<vmem>>, vector<64x1xi32>
    %cst = arith.constant dense<0xFF800000> : vector<64xf32>
    %5 = vector.multi_reduction <maximumf>, %3, %cst [1] : vector<64x16xf32> to vector<64xf32>
    %6 = vector.shape_cast %5 : vector<64xf32> to vector<64x1xf32>
    %7 = tpu.iota {dimensions = array<i32: 1>} : vector<64x16xi32>
    %8 = vector.broadcast %6 : vector<64x1xf32> to vector<64x16xf32>
    %9 = arith.cmpf oeq, %3, %8 : vector<64x16xf32>
    %c16_i32 = arith.constant 16 : i32
    %10 = vector.broadcast %c16_i32 : i32 to vector<64x16xi32>
    %11 = arith.select %9, %7, %10 : vector<64x16xi1>, vector<64x16xi32>
    %cst_4 = arith.constant dense<2147483647> : vector<64xi32>
    %12 = vector.multi_reduction <minsi>, %11, %cst_4 [1] : vector<64x16xi32> to vector<64xi32>
    %13 = vector.shape_cast %12 : vector<64xi32> to vector<64x1xi32>
    %14 = tpu.iota {dimensions = array<i32: 0>} : vector<64x1xi32>
    %c64_i32 = arith.constant 64 : i32
    %15 = arith.muli %arg0, %c64_i32 : i32
    %16 = vector.broadcast %15 : i32 to vector<64x1xi32>
    %17 = arith.addi %14, %16 : vector<64x1xi32>
    %c64_i32_5 = arith.constant 64 : i32
    %18 = vector.broadcast %c64_i32_5 : i32 to vector<64x1xi32>
    %19 = arith.cmpi slt, %17, %18 : vector<64x1xi32>
    %20 = arith.cmpi eq, %13, %4 : vector<64x1xi32>
    %21 = arith.andi %20, %19 : vector<64x1xi1>
    %c1_i32 = arith.constant 1 : i32
    %c0_i32_6 = arith.constant 0 : i32
    %22 = vector.broadcast %c1_i32 : i32 to vector<64x1xi32>
    %23 = vector.broadcast %c0_i32_6 : i32 to vector<64x1xi32>
    %24 = arith.select %21, %22, %23 : vector<64x1xi1>, vector<64x1xi32>
    %c0_7 = arith.constant 0 : index
    %c0_8 = arith.constant 0 : index
    %25 = memref.load %arg3[%c0_7, %c0_8] : memref<1x1xi32, #tpu.memory_space<smem>>
    %26 = vector.shape_cast %24 : vector<64x1xi32> to vector<1x64x1xi32>
    %cst_9 = arith.constant dense<0> : vector<1xi32>
    %27 = vector.multi_reduction <add>, %26, %cst_9 [1, 2] : vector<1x64x1xi32> to vector<1xi32>
    %28 = vector.shape_cast %27 : vector<1xi32> to vector<1x1x1xi32>
    %29 = vector.extract %28[0, 0, 0] : i32 from vector<1x1x1xi32>
    %30 = arith.addi %25, %29 : i32
    %c0_10 = arith.constant 0 : index
    %c0_11 = arith.constant 0 : index
    %31 = memref.load %arg3[%c0_10, %c0_11] : memref<1x1xi32, #tpu.memory_space<smem>>
    memref.store %30, %arg3[%c0_10, %c0_11] : memref<1x1xi32, #tpu.memory_space<smem>>
    return
  }
  func.func @transform_0(%arg0: i32) -> (i32, i32) {
    %c0_i32 = arith.constant 0 : i32
    %c0_i32_0 = arith.constant 0 : i32
    return %arg0, %c0_i32 : i32, i32
  }
  func.func @transform_1(%arg0: i32) -> (i32, i32) {
    %c0_i32 = arith.constant 0 : i32
    %c0_i32_0 = arith.constant 0 : i32
    return %arg0, %c0_i32 : i32, i32
  }
  func.func @transform_2(%arg0: i32) -> (i32, i32) {
    %c0_i32 = arith.constant 0 : i32
    %c0_i32_0 = arith.constant 0 : i32
    %c0_i32_1 = arith.constant 0 : i32
    return %c0_i32, %c0_i32_0 : i32, i32
  }
}

</mosaic_0001>

<bundles_post_ra>
// kernel: tpu_custom_call.1
= control target key start
LH: loop header
LB: loop body
LE: loop exit
PB: predicated region body
PF: predicated region fallthrough
CT: control target
= control target key end

     0   :  { %vm34_vm0 = vcmask 130048   ;;  %s423_s0 = inlined_call_operand.vmem [shape: f32[64,16], index: 0, kind: input, shape index: {}]   ;;  %s424_s1 = inlined_call_operand.vmem [shape: s32[64,1], index: 1, kind: input, shape index: {}]   ;;  %s425_s2 = inlined_call_operand.hbm [shape: s32[1,1], index: 2, kind: output, shape index: {}]  }
   0x1   :  { %v18_v0 = vld [vmem:[%s423_s0] sm:$0xff]  ;;  %v20_v1 = vld [vmem:[%s423_s0 + $0x10] sm:$0xff]  ;;  %v19_v2 = vld [vmem:[%s423_s0 + $0x8] sm:$0xff] }
   0x2   :  { %v35_v3 = vsel %vm34_vm0, %v18_v0, -inf  ;;  %v41_v4 = vsel %vm34_vm0, %v20_v1, -inf  ;;  %v21_v5 = vld [vmem:[%s423_s0 + $0x18] sm:$0xff]  ;;  %v38_v6 = vsel %vm34_vm0, %v19_v2, -inf }
   0x3   :  { %36 = vmax.xlane.f32.xlu0 %v35_v3  ;;  %42 = vmax.xlane.f32.xlu1 %v41_v4  ;;  %v44_v7 = vsel %vm34_vm0, %v21_v5, -inf }
   0x4   :  { %7 = vsyncpa [#allocation3], 0  ;;  %v22_v8 = vld [vmem:[%s423_s0 + $0x20] sm:$0xff]  ;;  %v23_v9 = vld [vmem:[%s423_s0 + $0x28] sm:$0xff]  ;;  %v59_v16 = vlaneseq  ;;  %s305_s14 = scalar_lea.hbm %s425_s2, 16 }
   0x5   :  { %v47_v10 = vsel %vm34_vm0, %v22_v8, -inf  ;;  %v50_v11 = vsel %vm34_vm0, %v23_v9, -inf  ;;  %v24_v12 = vld [vmem:[%s423_s0 + $0x30] sm:$0xff]  ;;  %v25_v13 = vld [vmem:[%s423_s0 + $0x38] sm:$0xff]  ;;  %p306_p0 = scmp.ne.s32.totalorder %s425_s2, %s305_s14  ;;  %p309_p1 = scmp.lt.u32.totalorder %s305_s14, %s425_s2 }
   0x6   :  { %v53_v14 = vsel %vm34_vm0, %v24_v12, -inf  ;;  %v56_v15 = vsel %vm34_vm0, %v25_v13, -inf  ;;  %v60_v17 = vand.u32 127, %v59_v16 }
   0x7   :  { %39 = vmax.xlane.f32.xlu0 %v38_v6  ;;  %45 = vmax.xlane.f32.xlu1 %v44_v7  ;;  %p311_p2 = pnand %p309_p1, %p306_p0 }
   0xb   :  { %48 = vmax.xlane.f32.xlu0 %v47_v10  ;;  %51 = vmax.xlane.f32.xlu1 %v50_v11 }
   0xf   :  { %54 = vmax.xlane.f32.xlu0 %v53_v14  ;;  %57 = vmax.xlane.f32.xlu1 %v56_v15 }
  0x90   :  { %v37_v18 = vpop.xlane.xlu0 %36  ;;  %v43_v19 = vpop.xlane.xlu1 %42 }
  0x91   :  { %vm61_vm1 = vcmp.eq.f32.partialorder %v18_v0, %v37_v18  ;;  %vm63_vm2 = vcmp.eq.f32.partialorder %v20_v1, %v43_v19 }
  0x92   :  { %v69_v20 = vsel %vm61_vm1, %v60_v17, 16  ;;  %v71_v21 = vsel %vm63_vm2, %v60_v17, 16  ;;  %vm249_vm2 = vcmask 7168  }
  0x93   :  { %v77_v22 = vsel %vm34_vm0, %v69_v20, 2147483647  ;;  %v107_v23 = vsel %vm34_vm0, %v71_v21, 2147483647 }
  0x94   :  { %v40_v24 = vpop.xlane.xlu0 %39  ;;  %v46_v25 = vpop.xlane.xlu1 %45  ;;  %v79_v26 = vshra.s32 %v77_v22, 16  ;;  %v109_v27 = vshra.s32 %v107_v23, 16  ;;  %v78_v58 = vand.u32 65535, %v77_v22  ;;  %v108_v62 = vand.u32 65535, %v107_v23 }
  0x95   :  { %vm62_vm3 = vcmp.eq.f32.partialorder %v19_v2, %v40_v24  ;;  %vm64_vm4 = vcmp.eq.f32.partialorder %v21_v5, %v46_v25 }
  0x96   :  { %v70_v28 = vsel %vm62_vm3, %v60_v17, 16  ;;  %v72_v29 = vsel %vm64_vm4, %v60_v17, 16  ;;  %v81_v30 = vcvt.s32.f32 %v79_v26  ;;  %v111_v35 = vcvt.s32.f32 %v109_v27 }
  0x97   :  { %v92_v31 = vsel %vm34_vm0, %v70_v28, 2147483647  ;;  %v122_v32 = vsel %vm34_vm0, %v72_v29, 2147483647  ;;  %v80_v60 = vcvt.s32.f32 %v78_v58  ;;  %v110_v3 = vcvt.s32.f32 %v108_v62  ;;  %v28_v62 = vld [vmem:[%s424_s1 + $0x10] sm:$0xff] }
  0x98   :  { %82 = vmin.xlane.f32.xlu0 %v81_v30  ;;  %v49_v33 = vpop.xlane.xlu0 %48  ;;  %v52_v34 = vpop.xlane.xlu1 %51  ;;  %v94_v36 = vshra.s32 %v92_v31, 16  ;;  %v124_v37 = vshra.s32 %v122_v32, 16  ;;  %v93_v61 = vand.u32 65535, %v92_v31  ;;  %v123_v4 = vand.u32 65535, %v122_v32 }
  0x99   :  { %vm65_vm5 = vcmp.eq.f32.partialorder %v22_v8, %v49_v33  ;;  %vm66_vm6 = vcmp.eq.f32.partialorder %v23_v9, %v52_v34 }
  0x9a   :  { %v73_v38 = vsel %vm65_vm5, %v60_v17, 16  ;;  %v74_v39 = vsel %vm66_vm6, %v60_v17, 16  ;;  %v96_v40 = vcvt.s32.f32 %v94_v36  ;;  %v126_v45 = vcvt.s32.f32 %v124_v37 }
  0x9b   :  { %v137_v41 = vsel %vm34_vm0, %v73_v38, 2147483647  ;;  %v152_v42 = vsel %vm34_vm0, %v74_v39, 2147483647  ;;  %v95_v2 = vcvt.s32.f32 %v93_v61  ;;  %v125_v10 = vcvt.s32.f32 %v123_v4  ;;  %v26_v38 = vld [vmem:[%s424_s1] sm:$0xff]  ;;  %v31_v4 = vld [vmem:[%s424_s1 + $0x28] sm:$0xff] }
  0x9c   :  { %112 = vmin.xlane.f32.xlu0 %v111_v35  ;;  %97 = vmin.xlane.f32.xlu1 %v96_v40  ;;  %v55_v43 = vpop.xlane.xlu0 %54  ;;  %v58_v44 = vpop.xlane.xlu1 %57  ;;  %v139_v46 = vshra.s32 %v137_v41, 16  ;;  %v154_v47 = vshra.s32 %v152_v42, 16  ;;  %v138_v5 = vand.u32 65535, %v137_v41 }
  0x9d   :  { %vm67_vm7 = vcmp.eq.f32.partialorder %v24_v12, %v55_v43  ;;  %vm68_vm8 = vcmp.eq.f32.partialorder %v25_v13, %v58_v44  ;;  %v153_v12 = vand.u32 65535, %v152_v42 }
  0x9e   :  { %v75_v48 = vsel %vm67_vm7, %v60_v17, 16  ;;  %v76_v49 = vsel %vm68_vm8, %v60_v17, 16  ;;  %v141_v50 = vcvt.s32.f32 %v139_v46  ;;  %v156_v53 = vcvt.s32.f32 %v154_v47  ;;  %v27_v47 = vld [vmem:[%s424_s1 + $0x8] sm:$0xff] }
  0x9f   :  { %v167_v51 = vsel %vm34_vm0, %v75_v48, 2147483647  ;;  %v182_v52 = vsel %vm34_vm0, %v76_v49, 2147483647  ;;  %v140_v11 = vcvt.s32.f32 %v138_v5  ;;  %v155_v18 = vcvt.s32.f32 %v153_v12  ;;  %v32_v5 = vld [vmem:[%s424_s1 + $0x30] sm:$0xff] }
  0xa0   :  { %127 = vmin.xlane.f32.xlu1 %v126_v45  ;;  %142 = vmin.xlane.f32.xlu0 %v141_v50  ;;  %v169_v54 = vshra.s32 %v167_v51, 16  ;;  %v184_v55 = vshra.s32 %v182_v52, 16  ;;  %v168_v13 = vand.u32 65535, %v167_v51  ;;  %v183_v20 = vand.u32 65535, %v182_v52  ;;  %v30_v51 = vld [vmem:[%s424_s1 + $0x20] sm:$0xff] }
  0xa2   :  { %v171_v56 = vcvt.s32.f32 %v169_v54  ;;  %v186_v57 = vcvt.s32.f32 %v184_v55  ;;  %v170_v19 = vcvt.s32.f32 %v168_v13  ;;  %v185_v24 = vcvt.s32.f32 %v183_v20 }
  0xa4   :  { %157 = vmin.xlane.f32.xlu1 %v156_v53  ;;  %172 = vmin.xlane.f32.xlu0 %v171_v56 }
  0xa8   :  { %187 = vmin.xlane.f32.xlu1 %v186_v57 }
 0x125   :  { %v83_v59 = vpop.xlane.xlu0 %82 }
 0x126   :  { %vm84_vm9 = vcmp.eq.f32.partialorder %v81_v30, %v83_v59  ;;  %v89_v26 = vcvt.f32.s32 %v83_v59 }
 0x127   :  { %v85_v63 = vsel %vm84_vm9, %v80_v60, inf }
 0x128   :  { %86 = vmin.xlane.f32.xlu0 %v85_v63  ;;  %v90_v30 = vshll.u32 %v89_v26, 16 }
 0x129   :  { %v98_v0 = vpop.xlane.xlu1 %97  ;;  %v374_v1 = vpop.xlane.xlu0 %112 }
 0x12a   :  { %vm99_vm10 = vcmp.eq.f32.partialorder %v96_v40, %v98_v0  ;;  %vm114_vm11 = vcmp.eq.f32.partialorder %v111_v35, %v374_v1  ;;  %v104_v29 = vcvt.f32.s32 %v98_v0  ;;  %v119_v37 = vcvt.f32.s32 %v374_v1 }
 0x12b   :  { %v100_v6 = vsel %vm99_vm10, %v95_v2, inf  ;;  %v115_v7 = vsel %vm114_vm11, %v110_v3, inf  ;;  %v29_v2 = vld [vmem:[%s424_s1 + $0x18] sm:$0xff] }
 0x12c   :  { %101 = vmin.xlane.f32.xlu1 %v100_v6  ;;  %116 = vmin.xlane.f32.xlu0 %v115_v7  ;;  %v105_v36 = vshll.u32 %v104_v29, 16 }
 0x12d   :  { %v128_v8 = vpop.xlane.xlu1 %127  ;;  %v143_v9 = vpop.xlane.xlu0 %142 }
 0x12e   :  { %vm129_vm12 = vcmp.eq.f32.partialorder %v126_v45, %v128_v8  ;;  %vm144_vm13 = vcmp.eq.f32.partialorder %v141_v50, %v143_v9  ;;  %v149_v33 = vcvt.f32.s32 %v143_v9  ;;  %v134_v39 = vcvt.f32.s32 %v128_v8 }
 0x12f   :  { %v130_v14 = vsel %vm129_vm12, %v125_v10, inf  ;;  %v145_v15 = vsel %vm144_vm13, %v140_v11, inf  ;;  %v120_v50 = vshll.u32 %v119_v37, 16 }
 0x130   :  { %131 = vmin.xlane.f32.xlu1 %v130_v14  ;;  %146 = vmin.xlane.f32.xlu0 %v145_v15  ;;  %v150_v46 = vshll.u32 %v149_v33, 16  ;;  %v135_v52 = vshll.u32 %v134_v39, 16 }
 0x131   :  { %v158_v16 = vpop.xlane.xlu1 %157  ;;  %v173_v17 = vpop.xlane.xlu0 %172 }
 0x132   :  { %vm159_vm14 = vcmp.eq.f32.partialorder %v156_v53, %v158_v16  ;;  %vm174_vm15 = vcmp.eq.f32.partialorder %v171_v56, %v173_v17  ;;  %v164_v40 = vcvt.f32.s32 %v158_v16  ;;  %v179_v41 = vcvt.f32.s32 %v173_v17  ;;  %v33_v17 = vld [vmem:[%s424_s1 + $0x38] sm:$0xff] }
 0x133   :  { %v160_v21 = vsel %vm159_vm14, %v155_v18, inf  ;;  %v175_v22 = vsel %vm174_vm15, %v170_v19, inf }
 0x134   :  { %161 = vmin.xlane.f32.xlu1 %v160_v21  ;;  %176 = vmin.xlane.f32.xlu0 %v175_v22  ;;  %v165_v53 = vshll.u32 %v164_v40, 16  ;;  %v180_v54 = vshll.u32 %v179_v41, 16 }
 0x135   :  { %v188_v23 = vpop.xlane.xlu1 %187 }
 0x136   :  { %vm189_vm0 = vcmp.eq.f32.partialorder %v186_v57, %v188_v23  ;;  %v194_v56 = vcvt.f32.s32 %v188_v23  ;;  %v317_v57 = vmov 0  }
 0x137   :  { %v190_v25 = vsel %vm189_vm0, %v185_v24, inf }
 0x138   :  { %191 = vmin.xlane.f32.xlu1 %v190_v25  ;;  %v195_v10 = vshll.u32 %v194_v56, 16 }
 0x1b5   :  { %v87_v27 = vpop.xlane.xlu0 %86 }
 0x1b6   :  { %v88_v28 = vcvt.f32.s32 %v87_v27 }
 0x1b8   :  { %v91_v34 = vadd.s32 %v90_v30, %v88_v28 }
 0x1b9   :  { %v102_v31 = vpop.xlane.xlu1 %101  ;;  %v117_v32 = vpop.xlane.xlu0 %116 }
 0x1ba   :  { %v103_v35 = vcvt.f32.s32 %v102_v31  ;;  %v118_v43 = vcvt.f32.s32 %v117_v32  ;;  %vm224_vm1 = vcmp.eq.s32.totalorder %v91_v34, %v26_v38 }
 0x1bb   :  { %v240_v58 = vsel %vm224_vm1, 1, %v317_v57 }
 0x1bc   :  { %v106_v42 = vadd.s32 %v105_v36, %v103_v35  ;;  %v121_v59 = vadd.s32 %v120_v50, %v118_v43  ;;  %v250_v6 = vsel %vm249_vm2, %v240_v58, 0 }
 0x1bd   :  { %v132_v44 = vpop.xlane.xlu1 %131  ;;  %v147_v45 = vpop.xlane.xlu0 %146 }
 0x1be   :  { %v133_v48 = vcvt.f32.s32 %v132_v44  ;;  %v148_v49 = vcvt.f32.s32 %v147_v45  ;;  %vm225_vm3 = vcmp.eq.s32.totalorder %v106_v42, %v27_v47  ;;  %vm226_vm5 = vcmp.eq.s32.totalorder %v121_v59, %v28_v62 }
 0x1bf   :  { %v241_v11 = vsel %vm225_vm3, 1, %v317_v57  ;;  %v242_v21 = vsel %vm226_vm5, 1, %v317_v57 }
 0x1c0   :  { %v151_v55 = vadd.s32 %v150_v46, %v148_v49  ;;  %v136_v63 = vadd.s32 %v135_v52, %v133_v48  ;;  %v251_v18 = vsel %vm249_vm2, %v241_v11, 0  ;;  %v252_v27 = vsel %vm249_vm2, %v242_v21, 0 }
 0x1c1   :  { %v162_v60 = vpop.xlane.xlu1 %161  ;;  %v177_v61 = vpop.xlane.xlu0 %176 }
 0x1c2   :  { %vm228_vm4 = vcmp.eq.s32.totalorder %v151_v55, %v30_v51  ;;  %v163_v0 = vcvt.f32.s32 %v162_v60  ;;  %v178_v1 = vcvt.f32.s32 %v177_v61  ;;  %vm227_vm6 = vcmp.eq.s32.totalorder %v136_v63, %v29_v2 }
 0x1c3   :  { %v244_v3 = vsel %vm228_vm4, 1, %v317_v57  ;;  %v243_v22 = vsel %vm227_vm6, 1, %v317_v57 }
 0x1c4   :  { %v254_v7 = vsel %vm249_vm2, %v244_v3, 0  ;;  %v166_v8 = vadd.s32 %v165_v53, %v163_v0  ;;  %v181_v9 = vadd.s32 %v180_v54, %v178_v1  ;;  %v253_v28 = vsel %vm249_vm2, %v243_v22, 0 }
 0x1c5   :  { %v255_v12 = vadd.s32 %v254_v7, %v250_v6  ;;  %v192_v13 = vpop.xlane.xlu1 %191 }
 0x1c6   :  { %vm229_vm7 = vcmp.eq.s32.totalorder %v166_v8, %v31_v4  ;;  %vm230_vm8 = vcmp.eq.s32.totalorder %v181_v9, %v32_v5  ;;  %v193_v14 = vcvt.f32.s32 %v192_v13 }
 0x1c7   :  { %v245_v15 = vsel %vm229_vm7, 1, %v317_v57  ;;  %v246_v16 = vsel %vm230_vm8, 1, %v317_v57 }
 0x1c8   :  { %v256_v19 = vsel %vm249_vm2, %v245_v15, 0  ;;  %v196_v20 = vadd.s32 %v195_v10, %v193_v14  ;;  %v258_v24 = vsel %vm249_vm2, %v246_v16, 0 }
 0x1c9   :  { %v257_v23 = vadd.s32 %v256_v19, %v251_v18  ;;  %v259_v30 = vadd.s32 %v258_v24, %v252_v27 }
 0x1ca   :  { %vm231_vm9 = vcmp.eq.s32.totalorder %v196_v20, %v33_v17 }
 0x1cb   :  { %v247_v25 = vsel %vm231_vm9, 1, %v317_v57  ;;  %v262_v26 = vadd.s32 %v257_v23, %v255_v12 }
 0x1cc   :  { %v260_v29 = vsel %vm249_vm2, %v247_v25, 0 }
 0x1cd   :  { %v261_v31 = vadd.s32 %v260_v29, %v253_v28 }
 0x1cf   :  { %v263_v32 = vadd.s32 %v261_v31, %v259_v30 }
 0x1d1   :  { %v264_v33 = vadd.s32 %v263_v32, %v262_v26 }
 0x1d3   :  { %v266_v34 = vshrl.u32 %v264_v33, 16  ;;  %v265_v35 = vand.u32 65535, %v264_v33 }
 0x1d5   :  { %v268_v36 = vcvt.s32.f32 %v266_v34  ;;  %v267_v37 = vcvt.s32.f32 %v265_v35 }
 0x1d7   :  { %271 = vadd.xlane.f32.xlu0 %v268_v36  ;;  %269 = vadd.xlane.f32.xlu1 %v267_v37 }
 0x264   :  { %v272_v38 = vpop.xlane.xlu0 %271  ;;  %v270_v39 = vpop.xlane.xlu1 %269 }
 0x265   :  { %v274_v40 = vcvt.f32.s32 %v272_v38  ;;  %v273_v42 = vcvt.f32.s32 %v270_v39 }
 0x267   :  { %v275_v41 = vshll.u32 %v274_v40, 16 }
 0x269   :  { %v276_v43 = vadd.s32 %v275_v41, %v273_v42 }
 0x26b   :  { %v277_v44 = vrot.slane %v276_v43, 4 }
 0x26d   :  { %v278_v45 = vadd.s32 %v277_v44, %v276_v43 }
 0x26f   :  { %v279_v46 = vrot.slane %v278_v45, 2 }
 0x271   :  { %v280_v47 = vadd.s32 %v279_v46, %v278_v45 }
 0x273   :  { %v281_v48 = vrot.slane %v280_v47, 1 }
 0x275   :  { %v282_v49 = vadd.s32 %v281_v48, %v280_v47 }
 0x277   :  { %300 = vpush %v282_v49 }
 0x2a8   :  { %s301_s1 = spop %300 }
 0x2a9   :  { %286 = sst [smem:[#allocation2]] %s301_s1 }
 0x2aa   :  { %314 = shalt.err (!%p311_p2)
}
 0x2ab   :  { %s318_s19 = smov [#allocation2]  }
 0x2ac   :  { %294 = dma.smem_to_hbm %s318_s19, 16, %s425_s2, [#allocation3]  }
 0x2ad   :  { %315 = dma.done.wait [#allocation3], 16  }
 0x2ae   :  { %316 = vsyncadd [#allocation3], 4294967280 }
 0x2af   :  { %298 = sfence }
 0x2b0   :  { %299 = vsyncpa [#allocation3], 1 }

</bundles_post_ra>
